<compile_context>
chip_gen: v6e
topology: v6e:2x2x1
jax: 0.10.0
libtpu: 0.0.40
codegen_flags: <defaults>
</compile_context>

<pallas_src>
import jax
import jax.numpy as jnp
from jax.experimental import pallas as pl
from jax.experimental.pallas import tpu as pltpu


def _round_up(x, m):
    return (x + m - 1) // m * m


def _complex_mul(a_re, a_im, b_re, b_im):
    return a_re * b_re - a_im * b_im, a_re * b_im + a_im * b_re


# --------------------------------------------------------------------------- #
# Pallas kernel: one (entity tile, row tile) per grid step.
#   qt_ref : (tile_m, 2*rank)  bf16  temporal query tile
#   qs_ref : (tile_m, 2*rank)  bf16  static   query tile
#   eT_ref : (2*rank, tile_n)  bf16  pre-transposed shared entity table tile
#   o1_ref : (tile_m, tile_n)  f32   temporal scores
#   o2_ref : (tile_m, tile_n)  f32   static   scores
# Both dots share the resident entity tile, so the big table is read once.
# --------------------------------------------------------------------------- #
def _joint_score_kernel(qt_ref, qs_ref, eT_ref, o1_ref, o2_ref):
    e = eT_ref[...]
    o1_ref[...] = jnp.dot(qt_ref[...], e,
                          preferred_element_type=jnp.float32).astype(o1_ref.dtype)
    o2_ref[...] = jnp.dot(qs_ref[...], e,
                          preferred_element_type=jnp.float32).astype(o2_ref.dtype)


def joint_complex_scores(lhs, rel_t, time, rel_s, entity_T, *,
                         tile_n=2048, tile_m=256, out_dtype=jnp.float32):
    """Fused temporal + static ComplEx scoring against all entities.

    lhs, rel_t, time, rel_s : (B, 2*rank) float32 gathered factors
    entity_T                : (2*rank, N) bf16 pre-transposed shared entity table
    returns (ans1, ans2)    : (B, N) temporal / static scores (out_dtype)
    """
    B, two_rank = lhs.shape
    rank = two_rank // 2
    N = entity_T.shape[1]
    q_dtype = entity_T.dtype
    q_item = jnp.dtype(q_dtype).itemsize
    e_item = jnp.dtype(entity_T.dtype).itemsize
    o_item = jnp.dtype(out_dtype).itemsize

    # ---- build both query slabs once (hoisted out of the per-tile loop) ----
    lhs_re, lhs_im = lhs[:, :rank], lhs[:, rank:]
    rt_re, rt_im = _complex_mul(rel_t[:, :rank], rel_t[:, rank:],
                                time[:, :rank], time[:, rank:])
    qt_re, qt_im = _complex_mul(lhs_re, lhs_im, rt_re, rt_im)        # lhs*(rel*time)
    qs_re, qs_im = _complex_mul(lhs_re, lhs_im,
                                rel_s[:, :rank], rel_s[:, rank:])    # lhs*rel
    qt = jnp.concatenate([qt_re, qt_im], axis=1).astype(q_dtype)
    qs = jnp.concatenate([qs_re, qs_im], axis=1).astype(q_dtype)

    # ---- row (M) tiling: multiples of 16 (full bf16 sublane groups) ----
    ROW = 16
    tile_m = max(ROW, _round_up(min(tile_m, _round_up(B, ROW)), ROW))
    B_pad = _round_up(B, tile_m)          # pad so row tiles are full (no ragged rows)
    if B_pad != B:
        qt = jnp.pad(qt, ((0, B_pad - B), (0, 0)))
        qs = jnp.pad(qs, ((0, B_pad - B), (0, 0)))

    # ---- entity-tile selection: big tiles, but >= ~8 grid steps (4/TC on v7x) ----
    if N <= 128:
        tile_n = N                                      # full-dim block (allowed)
    else:
        target_steps = min(8, pl.cdiv(N, 128))
        tile_n = max(128, min(_round_up(min(tile_n, N), 128),
                              _round_up(pl.cdiv(N, target_steps), 128)))

    # ---- exact VMEM budget (generation-aware; shrink tiles only if needed) ----
    def vmem_need(tm, tn):
        return (2 * two_rank * tn * e_item        # entity tile, double-buffered
                + 2 * 2 * tm * tn * o_item        # two output tiles, double-buffered
                + 2 * 2 * tm * two_rank * q_item)  # two query tiles, double-buffered

    try:
        vmem_cap = int(pltpu.get_tpu_info().vmem_capacity_bytes)
    except Exception:
        vmem_cap = 64 * 1024 * 1024               # conservative fallback (v7x per-TC)
    budget = (vmem_cap * 4) // 5                  # headroom for compiler scratch
    while tile_n > 128 and vmem_need(tile_m, tile_n) > budget:
        tile_n = max(128, _round_up(tile_n // 2, 128))
    while tile_m > ROW and vmem_need(tile_m, tile_n) > budget:
        tile_m = max(ROW, _round_up(tile_m // 2, ROW))
    need = vmem_need(tile_m, tile_n)
    vmem_limit = int(min(max(need + need // 4 + (1 << 20), 16 * 1024 * 1024),
                         (vmem_cap * 9) // 10))

    n_tiles = pl.cdiv(N, tile_n)
    m_tiles = pl.cdiv(B_pad, tile_m)
    grid = (n_tiles, m_tiles)   # entities OUTER, rows INNER -> entity streamed once

    out1, out2 = pl.pallas_call(
        _joint_score_kernel,
        out_shape=(jax.ShapeDtypeStruct((B_pad, N), out_dtype),
                   jax.ShapeDtypeStruct((B_pad, N), out_dtype)),
        grid_spec=pltpu.PrefetchScalarGridSpec(
            num_scalar_prefetch=0,
            grid=grid,
            in_specs=[
                pl.BlockSpec((tile_m, two_rank), lambda j, i: (i, 0)),  # temporal q
                pl.BlockSpec((tile_m, two_rank), lambda j, i: (i, 0)),  # static q
                pl.BlockSpec((two_rank, tile_n), lambda j, i: (0, j)),  # entity tile
            ],
            out_specs=[
                pl.BlockSpec((tile_m, tile_n), lambda j, i: (i, j)),
                pl.BlockSpec((tile_m, tile_n), lambda j, i: (i, j)),
            ],
        ),
        compiler_params=pltpu.CompilerParams(
            dimension_semantics=("parallel", "parallel"),
            vmem_limit_bytes=vmem_limit,
        ),
    )(qt, qs, entity_T)

    if B_pad != B:
        out1, out2 = out1[:B], out2[:B]
    return out1, out2


class JointModelPallas:
    """JointModel: temporal + static TKBC models sharing one entity embedding table.

    Mirrors JointModel.__init__ (static_model.set_entity_weights(temporal weights):
    literally the same array here). __call__(x) -> (ans1, ans2): scores of every
    query against all entities from the temporal and static models, one fused kernel.
    """

    def __init__(self, key, n_entities, n_relations, n_timestamps, rank,
                 init_scale=1e-2, tile_n=2048, tile_m=256,
                 entity_store_dtype=jnp.float32, stream_dtype=jnp.bfloat16):
        k1, k2, k3, k4 = jax.random.split(key, 4)
        self.rank = rank
        self.tile_n = tile_n
        self.tile_m = tile_m
        self.stream_dtype = stream_dtype
        # shared entity embeddings.  entity_store_dtype=jnp.bfloat16 avoids keeping a
        # duplicate f32 master next to the bf16 streaming copy (v5e HBM footprint).
        self.entity = (init_scale * jax.random.normal(
            k1, (n_entities, 2 * rank), jnp.float32)).astype(entity_store_dtype)
        self.rel_temporal = init_scale * jax.random.normal(
            k2, (n_relations, 2 * rank), jnp.float32)
        self.time = init_scale * jax.random.normal(
            k3, (n_timestamps, 2 * rank), jnp.float32)
        self.rel_static = init_scale * jax.random.normal(
            k4, (n_relations, 2 * rank), jnp.float32)
        self._refresh_entity_table()

    def _refresh_entity_table(self):
        # Pre-transposed low-precision streaming copy of the shared entity table.
        # TODO(synk): under training, regenerate this inside the jitted step (buffer
        # donation) instead of snapshotting; optionally stream fp8 (v7x) / int8+scale
        # (v5e/v6e) for a further ~2x HBM-traffic reduction.
        self.entity_T = jnp.asarray(self.entity, jnp.float32).T.astype(self.stream_dtype)

    def set_entity_weights(self, weights):
        self.entity = weights
        self._refresh_entity_table()

    def get_entity_weights(self):
        return self.entity

    def __call__(self, x):
        # x: (B, 5) int32 quadruples (lhs, rel, rhs, ts_start, ts_end); column 3 is
        # the timestamp used by the temporal model (matches base.py indexing).
        lhs = jnp.asarray(self.entity[x[:, 0]], jnp.float32)
        rel_t = self.rel_temporal[x[:, 1]]
        t = self.time[x[:, 3]]
        rel_s = self.rel_static[x[:, 1]]
        # TODO(synk): if the consumer is the filtered-ranking reduction, fuse the
        # (scores >= target) count into the kernel so the (B, N) slabs never hit HBM.
        return joint_complex_scores(lhs, rel_t, t, rel_s, self.entity_T,
                                    tile_n=self.tile_n, tile_m=self.tile_m)


# --------------------------------------------------------------------------- #
# Pure-JAX references for correctness checking.
# --------------------------------------------------------------------------- #
def _build_query(lhs, rel, time=None):
    rank = lhs.shape[1] // 2
    lhs_re, lhs_im = lhs[:, :rank], lhs[:, rank:]
    rel_re, rel_im = rel[:, :rank], rel[:, rank:]
    if time is not None:
        t_re, t_im = time[:, :rank], time[:, rank:]
        rel_re, rel_im = (rel_re * t_re - rel_im * t_im,
                          rel_re * t_im + rel_im * t_re)
    q_re = lhs_re * rel_re - lhs_im * rel_im
    q_im = lhs_re * rel_im + lhs_im * rel_re
    return jnp.concatenate([q_re, q_im], axis=1)


def _rel_err(a, r):
    return float(jnp.max(jnp.abs(a - r)) / (jnp.max(jnp.abs(r)) + 1e-30))


if __name__ == "__main__":
    key = jax.random.PRNGKey(0)
    k_model, k_q, k_ts = jax.random.split(key, 3)

    n_entities = 256
    n_relations = 8
    n_timestamps = 32
    rank = 64
    batch = 8

    model = JointModelPallas(k_model, n_entities, n_relations, n_timestamps, rank)

    # deterministic small query batch: (lhs, rel, rhs, ts_start, ts_end)
    lhs_idx = jax.random.randint(k_q, (batch,), 0, n_entities)
    rel_idx = jax.random.randint(k_q, (batch,), 0, n_relations)
    rhs_idx = jax.random.randint(k_ts, (batch,), 0, n_entities)
    ts_idx = jax.random.randint(k_ts, (batch,), 0, n_timestamps)
    x = jnp.stack([lhs_idx, rel_idx, rhs_idx, ts_idx, ts_idx], axis=1).astype(jnp.int32)

    ans1, ans2 = model(x)
    jax.block_until_ready((ans1, ans2))
    assert ans1.shape == (batch, n_entities) and ans2.shape == (batch, n_entities)

    # ---- correctness vs pure-JAX references ----
    lhs = jnp.asarray(model.entity[x[:, 0]], jnp.float32)
    qt = _build_query(lhs, model.rel_temporal[x[:, 1]], time=model.time[x[:, 3]])
    qs = _build_query(lhs, model.rel_static[x[:, 1]])

    # bf16-matched reference (same casts as the kernel, f32 accumulation)
    ref1_bf16 = jnp.dot(qt.astype(jnp.bfloat16), model.entity_T,
                        preferred_element_type=jnp.float32)
    ref2_bf16 = jnp.dot(qs.astype(jnp.bfloat16), model.entity_T,
                        preferred_element_type=jnp.float32)
    assert _rel_err(ans1, ref1_bf16) < 5e-3, _rel_err(ans1, ref1_bf16)
    assert _rel_err(ans2, ref2_bf16) < 5e-3, _rel_err(ans2, ref2_bf16)

    # full-f32 semantic reference (looser tolerance: bf16 operand rounding)
    ref1_f32 = qt @ jnp.asarray(model.entity, jnp.float32).T
    ref2_f32 = qs @ jnp.asarray(model.entity, jnp.float32).T
    assert _rel_err(ans1, ref1_f32) < 3e-2, _rel_err(ans1, ref1_f32)
    assert _rel_err(ans2, ref2_f32) < 3e-2, _rel_err(ans2, ref2_f32)

    print("KERNEL_OK")
</pallas_src>

<mosaic_0001>
module attributes {stable_mosaic.version = 11 : i64} {
  func.func @_joint_score_kernel(%arg0: i32, %arg1: i32, %arg2: memref<16x128xbf16, #tpu.memory_space<vmem>>, %arg3: memref<16x128xbf16, #tpu.memory_space<vmem>>, %arg4: memref<128x128xbf16, #tpu.memory_space<vmem>>, %arg5: memref<16x128xf32, #tpu.memory_space<vmem>>, %arg6: memref<16x128xf32, #tpu.memory_space<vmem>>) attributes {dimension_semantics = [#tpu.dimension_semantics<parallel>, #tpu.dimension_semantics<parallel>], iteration_bounds = array<i64: 2, 1>, scalar_prefetch = 0 : i64, scratch_operands = 0 : i64, tpu.core_type = #tpu.core_type<tc>, window_params = [{transform_indices = @transform_0, window_bounds = array<i64: 16, 128>}, {transform_indices = @transform_1, window_bounds = array<i64: 16, 128>}, {transform_indices = @transform_2, window_bounds = array<i64: 128, 128>}, {transform_indices = @transform_3, window_bounds = array<i64: 16, 128>}, {transform_indices = @transform_4, window_bounds = array<i64: 16, 128>}]} {
    %c0 = arith.constant 0 : index
    %c0_0 = arith.constant 0 : index
    %0 = vector.load %arg4[%c0, %c0_0] : memref<128x128xbf16, #tpu.memory_space<vmem>>, vector<128x128xbf16>
    %c0_1 = arith.constant 0 : index
    %c0_2 = arith.constant 0 : index
    %1 = vector.load %arg2[%c0_1, %c0_2] : memref<16x128xbf16, #tpu.memory_space<vmem>>, vector<16x128xbf16>
    %cst = arith.constant dense<0.000000e+00> : vector<16x128xf32>
    %2 = tpu.matmul %1, %0, %cst {dimension_numbers = #tpu.dot_dimension_numbers<[1], [0], [0], [1], [0, 0, 1, 1], [], []>} : vector<16x128xbf16>, vector<128x128xbf16>, vector<16x128xf32> -> vector<16x128xf32>
    %c0_3 = arith.constant 0 : index
    %c0_4 = arith.constant 0 : index
    %3 = vector.load %arg5[%c0_3, %c0_4] : memref<16x128xf32, #tpu.memory_space<vmem>>, vector<16x128xf32>
    tpu.vector_store %arg5[%c0_3, %c0_4], %2 {strides = array<i32>} : memref<16x128xf32, #tpu.memory_space<vmem>>, vector<16x128xf32>,
    %c0_5 = arith.constant 0 : index
    %c0_6 = arith.constant 0 : index
    %4 = vector.load %arg3[%c0_5, %c0_6] : memref<16x128xbf16, #tpu.memory_space<vmem>>, vector<16x128xbf16>
    %cst_7 = arith.constant dense<0.000000e+00> : vector<16x128xf32>
    %5 = tpu.matmul %4, %0, %cst_7 {dimension_numbers = #tpu.dot_dimension_numbers<[1], [0], [0], [1], [0, 0, 1, 1], [], []>} : vector<16x128xbf16>, vector<128x128xbf16>, vector<16x128xf32> -> vector<16x128xf32>
    %c0_8 = arith.constant 0 : index
    %c0_9 = arith.constant 0 : index
    %6 = vector.load %arg6[%c0_8, %c0_9] : memref<16x128xf32, #tpu.memory_space<vmem>>, vector<16x128xf32>
    tpu.vector_store %arg6[%c0_8, %c0_9], %5 {strides = array<i32>} : memref<16x128xf32, #tpu.memory_space<vmem>>, vector<16x128xf32>,
    return
  }
  func.func @transform_0(%arg0: i32, %arg1: i32) -> (i32, i32) {
    %c0_i32 = arith.constant 0 : i32
    %c0_i32_0 = arith.constant 0 : i32
    return %arg1, %c0_i32 : i32, i32
  }
  func.func @transform_1(%arg0: i32, %arg1: i32) -> (i32, i32) {
    %c0_i32 = arith.constant 0 : i32
    %c0_i32_0 = arith.constant 0 : i32
    return %arg1, %c0_i32 : i32, i32
  }
  func.func @transform_2(%arg0: i32, %arg1: i32) -> (i32, i32) {
    %c0_i32 = arith.constant 0 : i32
    %c0_i32_0 = arith.constant 0 : i32
    return %c0_i32, %arg0 : i32, i32
  }
  func.func @transform_3(%arg0: i32, %arg1: i32) -> (i32, i32) {
    %c0_i32 = arith.constant 0 : i32
    return %arg1, %arg0 : i32, i32
  }
  func.func @transform_4(%arg0: i32, %arg1: i32) -> (i32, i32) {
    %c0_i32 = arith.constant 0 : i32
    return %arg1, %arg0 : i32, i32
  }
}

</mosaic_0001>

<bundles_post_ra>
// kernel: tpu_custom_call.1
= control target key start
LH: loop header
LB: loop body
LE: loop exit
PB: predicated region body
PF: predicated region fallthrough
CT: control target
= control target key end

     0   :  { %s1313_s0 = inlined_call_operand.hbm [shape: bf16[16,128], index: 0, kind: input, shape index: {}]   ;;  %s1314_s1 = inlined_call_operand.hbm [shape: bf16[16,128], index: 1, kind: input, shape index: {}]   ;;  %s1315_s2 = inlined_call_operand.hbm [shape: bf16[128,256], index: 2, kind: input, shape index: {}]   ;;  %s1316_s3 = inlined_call_operand.hbm [shape: f32[16,256], index: 3, kind: output, shape index: {0}]   ;;  %s1317_s4 = inlined_call_operand.hbm [shape: f32[16,256], index: 4, kind: output, shape index: {1}]  }
   0x1   :  { %1322 = sst [smem:[#allocation16_spill]] %s1313_s0 }
   0x2   :  { %1323 = sst [smem:[#allocation17_spill]] %s1314_s1 }
   0x3   :  { %10 = vsyncpa [#allocation3], 0 }
   0x4   :  { %11 = vsyncpa [#allocation6], 0 }
   0x5   :  { %12 = vsyncpa [#allocation4], 0 }
   0x6   :  { %14 = vsyncpa [#allocation4 + $0x1], 0 }
   0x7   :  { %15 = vsyncpa [#allocation10], 0 }
   0x8   :  { %17 = vsyncpa [#allocation10 + $0x1], 0  ;;  %s1067_s15 = smov 0   ;;  %s1069_s16 = smov 0  }
   0x9   :  { %s1071_s17 = smov 0   ;;  %s1073_s18 = smov 0  }
   0xa   :  { %s1075_s19 = smov 0   ;;  %s1077_s20 = smov 0  }
   0xb LB: > { %s1098_s21 = sadd.s32 4294967295, %s1027_s20   ;;  %s636_s22 = sadd.s32 4294967294, %s1027_s20   ;;  %s1027_s20 = sphi %s1077_s20, %s23_s20   ;;  %s1023_s19 = sphi %s1075_s19, %s1347_s19   ;;  %s1019_s18 = sphi %s1073_s18, %s1346_s18   ;;  %s1015_s17 = sphi %s1071_s17, %s1345_s17   ;;  %s1011_s16 = sphi %s1069_s16, %s1344_s16   ;;  %s1007_s15 = sphi %s1067_s15, %s1343_s15  }
   0xc   : > { %p101_p0 = scmp.ne.s32.totalorder %s1015_s17, %s1011_s16  ;;  %p102_p1 = scmp.eq.s32.totalorder %s1027_s20, 0 }
   0xd   : > { %p107_p2 = scmp.ne.s32.totalorder %s1011_s16, %s1007_s15  ;;  %p1318_p3 = scmp.eq.s32.totalorder %s1098_s21, 0 }
   0xe   : > { %p133_p4 = scmp.eq.s32.totalorder %s1098_s21, 1  ;;  %p1109_p5 = por %p102_p1, %p101_p0 }
   0xf   : > { %p139_p6 = scmp.eq.s32.totalorder %s636_s22, 1  ;;  %p1115_p7 = por %p1318_p3, %p107_p2 }
  0x10   : > { %p1119_p8 = por %p133_p4, %p101_p0  ;;  %p637_p10 = scmp.ge.s32.totalorder %s1027_s20, 1 }
  0x11   : > { %p1123_p9 = por %p139_p6, %p107_p2  ;;  %p174_p11 = scmp.lt.s32.totalorder %s1027_s20, 3 }
  0x12   : > { %s1326_s26 = scalar_select %p1119_p8, 1, 0 }
  0x13   : > { %s1327_s27 = scalar_select %p1123_p9, 1, 0 }
  0x14   : > { %p1129_p12 = pnand %p637_p10, %p174_p11  ;;  %s1029_s29 = smov [#allocation2]  }
  0x15   : > { %s189_s30 = sshll.u32 %s1029_s29, 4  ;;  %p757_p1 = scmp.lt.s32.totalorder %s1027_s20, 2  ;;  %s190_s30 = int_to_ptr.vmem [resolvable:$true] %s189_s30 }
  0x16   : > { %p737_p13 = pneg %p1129_p12  ;;  %s1030_s6 = smov [#allocation5]  }
  0x17   : > { %s205_s7 = sshll.u32 %s1030_s6, 4  ;;  %p1145_p2 = pnand %p757_p1, %p1109_p5  ;;  %s206_s7 = int_to_ptr.vmem [resolvable:$true] %s205_s7 }
  0x18   : > { %p1139_p4 = pnand %p737_p13, %p1318_p3  ;;  %s840_s9 = scalar_lea.vmem %s190_s30, 128 }
  0x19   : > { %p841_p10 = scmp.ne.s32.totalorder %s190_s30, %s840_s9  ;;  %p848_p0 = scmp.lt.s32.totalorder %s190_s30, %s190_s30 }
  0x1a   : > { %p831_p6 = pneg %p1139_p4  ;;  %p849_p3 = scmp.lt.s32.totalorder %s840_s9, %s840_s9 }
  0x1c   : > { %p843_p11 = pnand %p841_p10, %p831_p6  ;;  %p850_p9 = por %p849_p3, %p848_p0 }
  0x1e   : > { %p844_p13 = pneg %p843_p11 }
  0x20   : > { %p851_p8 = pnand %p850_p9, %p844_p13 }
  0x22   : > { %854 = shalt.err (!%p851_p8)
}
  0x23   : > { %s1320_s10 = smov 64   ;;  %s1321_s11 = smov 4  }
  0x24   : > { %s1331_s0 = sld [smem:[#allocation16_spill]]  ;;  %s866_s14 = scalar_lea.vmem %s206_s7, 128 }
  0x25   : > { %p867_p5 = scmp.ne.s32.totalorder %s206_s7, %s866_s14  ;;  %p874_p9 = scmp.lt.s32.totalorder %s206_s7, %s206_s7 }
  0x26   : > { %p875_p8 = scmp.lt.s32.totalorder %s866_s14, %s866_s14 }
  0x27   : > { %p869_p1 = pnand %p867_p5, %p831_p6 }
  0x28   : > { %p876_p0 = por %p875_p8, %p874_p9 }
  0x29   : > { %p870_p3 = pneg %p869_p1 }
  0x2a   : > { %740 = dma.hbm_to_vmem [thread:$0]  (!%p1139_p4), %s1331_s0, 128, %s190_s30, [#allocation3], %s1320_s10, %s1320_s10, %s1321_s11  }
  0x2b   : > { %p877_p10 = pnand %p876_p0, %p870_p3 }
  0x2d   : > { %880 = shalt.err (!%p877_p10)
}
  0x2e   : > { %s1332_s1 = sld [smem:[#allocation17_spill]]  ;;  %s35_s29 = sadd.s32 1, %s1023_s19 }
  0x2f   : > { %s219_s30 = sand.u32 1, %s1027_s20   ;;  %p37_p6 = scmp.ge.s32.totalorder %s35_s29, 2 }
  0x30   : > { %s221_s6 = sand.u32 1, %s1015_s17   ;;  %s642_s5 = sshll.u32 %s1023_s19, 6 }
  0x31   : > { %s1349_s29 = smov (%p37_p6, %s35_s29), 0  ;;  %s641_s9 = sshll.u32 %s221_s6, 6 }
  0x32   : > { %s228_s14 = scalar_lea.hbm %s1315_s2, %s642_s5  ;;  %s91_s22 = ssub.s32 %s1023_s19, %s1349_s29 }
  0x33   : > { %p92_p11 = scmp.eq.s32.totalorder %s91_s22, 0  ;;  %s223_s24 = scalar_lea.vmem [#allocation7], %s641_s9 }
  0x34   : > { %743 = dma.hbm_to_vmem [thread:$0]  (!%p1139_p4), %s1332_s1, 128, %s206_s7, [#allocation6], %s1320_s10, %s1320_s10, %s1321_s11  }
  0x35   : > { %s229_s23 = sshll.u32 %s223_s24, 4  ;;  %s1333_s7 = sadd.s32 1, %s1015_s17  ;;  %s230_s23 = int_to_ptr.vmem [resolvable:$true] %s229_s23 }
  0x36   : > { %s1187_s10 = scalar_select %p92_p11, %s1015_s17, %s1333_s7  }
  0x37   : > { %s220_s11 = scalar_lea.sflag [#allocation3], %s219_s30  ;;  %p883_p4 = pneg %p1145_p2 }
  0x38   : > { %s894_s0 = scalar_lea.vmem %s230_s23, 1024  ;;  %s1033_s6 = smov [#allocation7]  }
  0x39   : > { %p895_p13 = scmp.ne.s32.totalorder %s230_s23, %s894_s0  ;;  %s899_s1 = sshll.u32 %s1033_s6, 4  ;;  %s900_s1 = int_to_ptr.vmem [resolvable:$false] %s899_s1 }
  0x3a   : > { %s901_s12 = scalar_lea.vmem %s900_s1, 2048  ;;  %p902_p3 = scmp.lt.s32.totalorder %s230_s23, %s900_s1 }
  0x3b   : > { %p897_p5 = pnand %p895_p13, %p883_p4  ;;  %p903_p9 = scmp.lt.s32.totalorder %s901_s12, %s894_s0 }
  0x3d   : > { %p898_p1 = pneg %p897_p5  ;;  %p904_p8 = por %p903_p9, %p902_p3 }
  0x3f   : > { %p905_p0 = pnand %p904_p8, %p898_p1 }
  0x41   : > { %908 = shalt.err (!%p905_p0)
}
  0x42   : > { %s1034_s5 = smov 128   ;;  %s1334_s9 = smov 4  }
  0x43   : > { %s1335_s30 = smov 64   ;;  %241 = sbr.rel (%p1129_p12) target bundleno = 349 (0x15d), region = 32 }
  0x44   : > { %747 = dma.hbm_to_vmem [thread:$0]  (!%p1145_p2), %s228_s14, 1024, %s230_s23, %s220_s11, %s1034_s5, %s1335_s30, %s1334_s9  }
  0x45   : > { %p1336_p10 = scmp.eq.s32.totalorder (!%p1129_p12), %s1098_s21, 0 }
  0x48   : > { %986 = dma.done.wait (%p1336_p10), [#allocation3], 128   ;;  %p1337_p6 = pmov %p1336_p10 }
  0x4a   : > { %988 = vsyncadd (%p1337_p6), [#allocation3], 4294967168  ;;  %p1338_p11 = pmov %p1337_p6 }
  0x4b   : > { %p1339_p4 = pmov %p1337_p6 }
  0x4c   : > { %990 = dma.done.wait (%p1338_p11), [#allocation6], 128  }
  0x4d   : > { %992 = vsyncadd (%p1339_p4), [#allocation6], 4294967168  ;;  %s251_s0 = sand.u32 1, %s1098_s21   ;;  %s1207_s1 = sand.u32 1, %s1011_s16  }
  0x4e   : > { %s646_s23 = sshll.u32 %s1207_s1, 6  ;;  %s252_s28 = scalar_lea.sflag [#allocation3], %s251_s0 }
  0x4f   : > { %s1210_s8 = scalar_lea.vmem [#allocation7], %s646_s23 }
  0x50   : > { %994 = dma.done.wait (%p1115_p7), %s252_s28, 1024  }
  0x51   : > { %996 = vsyncadd (%p1115_p7), %s252_s28, 4294966272  ;;  %v1035_v0 = vmov 0.0   ;;  %vm1036_vm0 = vmmov 0   ;;  %v819_v1 = vld [vmem:[%s1210_s8 + $0x38] sm:$0xff]   ;;  %v820_v2 = vld [vmem:[%s1210_s8 + $0x30] sm:$0xff]   ;;  %s647_s21 = sshll.u32 %s1207_s1, 4 }
  0x52   : > { %683 = vmatprep.subr.bf16.mxu0 %v1035_v0  ;;  %703 = vmatprep.subr.bf16.mxu1 %v1035_v0  ;;  %v821_v3 = vld [vmem:[%s1210_s8 + $0x28] sm:$0xff]   ;;  %v822_v4 = vld [vmem:[%s1210_s8 + $0x20] sm:$0xff]   ;;  %v823_v5 = vld [vmem:[%s1210_s8 + $0x18] sm:$0xff]   ;;  %s277_s25 = scalar_lea.vmem [#allocation8], %s647_s21  ;;  %s284_s13 = scalar_lea.vmem [#allocation9], %s647_s21 }
  0x53   : > { %699 = vmatprep.mubr.msk.bf16.mxu0 %vm1036_vm0, %v1035_v0  ;;  %719 = vmatprep.mubr.msk.bf16.mxu1 %vm1036_vm0, %v1035_v0  ;;  %v824_v6 = vld [vmem:[%s1210_s8 + $0x10] sm:$0xff]   ;;  %v825_v7 = vld [vmem:[%s1210_s8 + $0x8] sm:$0xff]   ;;  %v826_v8 = vld [vmem:[%s1210_s8] sm:$0xff]   ;;  %s477_s11 = sshll.u32 %s277_s25, 4  ;;  %s495_s14 = sshll.u32 %s284_s13, 4  ;;  %s1226_s11 = int_to_ptr.vmem [resolvable:$true] %s477_s11  ;;  %s1228_s14 = int_to_ptr.vmem [resolvable:$true] %s495_s14 }
  0x54   : > { %684 = vmatpush3.bf16.msra.mxu0 %v819_v1  ;;  %704 = vmatpush3.bf16.msra.mxu1 %v819_v1  ;;  %v827_v9 = vld [vmem:[#allocation2] sm:$0xff]   ;;  %v828_v10 = vld [vmem:[#allocation5] sm:$0xff]   ;;  %s661_s22 = sshll.u32 %s1019_s18, 7  ;;  %s457_s9 = scalar_lea.sflag [#allocation4], %s1207_s1 }
  0x55   : > { %685 = vmatprep.subr.bf16.mxu0 %v1035_v0  ;;  %705 = vmatprep.subr.bf16.mxu1 %v1035_v0  ;;  %s1233_s6 = scalar_lea.hbm %s1316_s3, %s661_s22  ;;  %s1238_s5 = scalar_lea.hbm %s1317_s4, %s661_s22 }
  0x56   : > { %s909_s30 = scalar_lea.vmem %s1226_s11, 256  ;;  %p1340_p12 = scmp.ne.s32.totalorder %s1326_s26, 0 }
  0x57   : > { %p910_p7 = scmp.ne.s32.totalorder %s1226_s11, %s909_s30  ;;  %s1037_s0 = smov [#allocation8]  }
  0x58   : > { %686 = vmatpush3.bf16.msra.mxu0 %v820_v2  ;;  %706 = vmatpush3.bf16.msra.mxu1 %v820_v2  ;;  %s913_s23 = sshll.u32 %s1037_s0, 4  ;;  %s914_s23 = int_to_ptr.vmem [resolvable:$false] %s913_s23 }
  0x59   : > { %687 = vmatprep.subr.bf16.mxu0 %v1035_v0  ;;  %707 = vmatprep.subr.bf16.mxu1 %v1035_v0  ;;  %p911_p2 = pnand %p910_p7, %p1340_p12  ;;  %s915_s28 = scalar_lea.vmem %s914_s23, 512 }
  0x5a   : > { %p916_p5 = scmp.lt.s32.totalorder %s1226_s11, %s914_s23  ;;  %p917_p1 = scmp.lt.s32.totalorder %s915_s28, %s909_s30 }
  0x5b   : > { %p912_p13 = pneg %p911_p2 }
  0x5c   : > { %688 = vmatpush3.bf16.msra.mxu0 %v821_v3  ;;  %708 = vmatpush3.bf16.msra.mxu1 %v821_v3  ;;  %p918_p3 = por %p917_p1, %p916_p5 }
  0x5d   : > { %689 = vmatprep.subr.bf16.mxu0 %v1035_v0  ;;  %709 = vmatprep.subr.bf16.mxu1 %v1035_v0 }
  0x5e   : > { %p919_p9 = pnand %p918_p3, %p912_p13 }
  0x60   : > { %690 = vmatpush3.bf16.msra.mxu0 %v822_v4  ;;  %710 = vmatpush3.bf16.msra.mxu1 %v822_v4 }
  0x61   : > { %691 = vmatprep.subr.bf16.mxu0 %v1035_v0  ;;  %711 = vmatprep.subr.bf16.mxu1 %v1035_v0 }
  0x64   : > { %692 = vmatpush3.bf16.msra.mxu0 %v823_v5  ;;  %712 = vmatpush3.bf16.msra.mxu1 %v823_v5 }
  0x65   : > { %693 = vmatprep.subr.bf16.mxu0 %v1035_v0  ;;  %713 = vmatprep.subr.bf16.mxu1 %v1035_v0 }
  0x68   : > { %694 = vmatpush3.bf16.msra.mxu0 %v824_v6  ;;  %714 = vmatpush3.bf16.msra.mxu1 %v824_v6 }
  0x69   : > { %695 = vmatprep.subr.bf16.mxu0 %v1035_v0  ;;  %715 = vmatprep.subr.bf16.mxu1 %v1035_v0 }
  0x6c   : > { %696 = vmatpush3.bf16.msra.mxu0 %v825_v7  ;;  %716 = vmatpush3.bf16.msra.mxu1 %v825_v7 }
  0x6d   : > { %697 = vmatprep.subr.bf16.mxu0 %v1035_v0  ;;  %717 = vmatprep.subr.bf16.mxu1 %v1035_v0 }
  0x70   : > { %698 = vmatpush3.bf16.msra.mxu0 %v826_v8  ;;  %718 = vmatpush3.bf16.msra.mxu1 %v826_v8 }
  0x73   : > { %700 = vmatmul.mubr.bf16.vlgmr.msra.gmra.mxu0 %v827_v9  ;;  %720 = vmatmul.mubr.bf16.vlgmr.msra.gmra.mxu1 %v828_v10 }
 0x133   : > { %v396_v11 = vpop.f32.mrf.mxu0  ;;  %v447_v12 = vpop.f32.mrf.mxu1 }
 0x134   : > { %403 = vst [vmem:[%s277_s25] sm:$0xff] %v396_v11  ;;  %454 = vst [vmem:[%s284_s13] sm:$0xff] %v447_v12 }
 0x135   : > { %v701_v13 = vpop.f32.mrf.mxu0  ;;  %v721_v14 = vpop.f32.mrf.mxu1 }
 0x137   : > { %v399_v15 = vpop.f32.mrf.mxu0  ;;  %v450_v16 = vpop.f32.mrf.mxu1 }
 0x138   : > { %404 = vst [vmem:[%s277_s25 + $0x8] sm:$0xff] %v399_v15  ;;  %455 = vst [vmem:[%s284_s13 + $0x8] sm:$0xff] %v450_v16 }
 0x139   : > { %v702_v17 = vpop.f32.mrf.mxu0  ;;  %v722_v18 = vpop.f32.mrf.mxu1 }
 0x13a   : > { %922 = shalt.err (!%p919_p9)
}
 0x13b   : > { %s923_s8 = scalar_lea.hbm %s1233_s6, 256  ;;  %s927_s13 = scalar_lea.hbm %s1316_s3, 512 }
 0x13c   : > { %p924_p8 = scmp.ne.s32.totalorder %s1233_s6, %s923_s8  ;;  %p928_p6 = scmp.lt.s32.totalorder %s1233_s6, %s1316_s3 }
 0x13d   : > { %p929_p11 = scmp.lt.s32.totalorder %s927_s13, %s923_s8 }
 0x13e   : > { %p925_p0 = pnand %p924_p8, %p1340_p12 }
 0x13f   : > { %p930_p4 = por %p929_p11, %p928_p6 }
 0x140   : > { %p926_p10 = pneg %p925_p0 }
 0x142   : > { %p931_p7 = pnand %p930_p4, %p926_p10 }
 0x144   : > { %934 = shalt.err (!%p931_p7)
}
 0x145   : > { %s1038_s7 = smov 128   ;;  %s1039_s18 = smov 256  }
 0x146   : > { %s1040_s12 = smov 8   ;;  %s462_s30 = scalar_lea.sflag [#allocation10], %s1207_s1 }
 0x147   : > { %733 = dma.vmem_to_hbm [thread:$0]  (%p1340_p12), %s1226_s11, 256, %s1233_s6, %s457_s9, %s1038_s7, %s1039_s18, %s1040_s12  }
 0x148   : > { %s935_s0 = scalar_lea.vmem %s1228_s14, 256  ;;  %s1041_s23 = smov [#allocation9]  }
 0x149   : > { %p936_p2 = scmp.ne.s32.totalorder %s1228_s14, %s935_s0  ;;  %s939_s28 = sshll.u32 %s1041_s23, 4  ;;  %s940_s28 = int_to_ptr.vmem [resolvable:$false] %s939_s28 }
 0x14a   : > { %s941_s8 = scalar_lea.vmem %s940_s28, 512  ;;  %p942_p1 = scmp.lt.s32.totalorder %s1228_s14, %s940_s28 }
 0x14b   : > { %p937_p13 = pnand %p936_p2, %p1340_p12  ;;  %p943_p3 = scmp.lt.s32.totalorder %s941_s8, %s935_s0 }
 0x14d   : > { %p938_p5 = pneg %p937_p13  ;;  %p944_p9 = por %p943_p3, %p942_p1 }
 0x14f   : > { %p945_p8 = pnand %p944_p9, %p938_p5 }
 0x151   : > { %948 = shalt.err (!%p945_p8)
}
 0x152   : > { %s949_s11 = scalar_lea.hbm %s1238_s5, 256  ;;  %s953_s9 = scalar_lea.hbm %s1317_s4, 512 }
 0x153   : > { %p950_p0 = scmp.ne.s32.totalorder %s1238_s5, %s949_s11  ;;  %p954_p11 = scmp.lt.s32.totalorder %s1238_s5, %s1317_s4 }
 0x154   : > { %p955_p4 = scmp.lt.s32.totalorder %s953_s9, %s949_s11 }
 0x155   : > { %p951_p10 = pnand %p950_p0, %p1340_p12 }
 0x156   : > { %p956_p7 = por %p955_p4, %p954_p11 }
 0x157   : > { %p952_p6 = pneg %p951_p10 }
 0x159   : > { %p957_p2 = pnand %p956_p7, %p952_p6 }
 0x15b   : > { %960 = shalt.err (!%p957_p2)
}
 0x15c   : > { %734 = dma.vmem_to_hbm [thread:$0]  (%p1340_p12), %s1228_s14, 256, %s1238_s5, %s462_s30, %s1038_s7, %s1039_s18, %s1040_s12  }
 0x15d PF: > { %s510_s13 = sand.u32 1, %s1007_s15   ;;  %p1341_p13 = scmp.ne.s32.totalorder %s1327_s27, 0 }
 0x15e   : > { %p1342_p5 = scmp.ge.s32.totalorder %s1027_s20, 2  ;;  %s511_s22 = scalar_lea.sflag [#allocation4], %s510_s13 }
 0x160   : > { %p749_p1 = pnand %p1342_p5, %p1341_p13 }
 0x162   : > { %p750_p3 = pneg %p749_p1 }
 0x164   : > { %998 = dma.done.wait (%p750_p3), %s511_s22, 256  }
 0x165   : > { %1000 = vsyncadd (%p750_p3), %s511_s22, 4294967040  ;;  %s520_s24 = scalar_lea.sflag [#allocation10], %s510_s13 }
 0x166   : > { %1002 = dma.done.wait (%p750_p3), %s520_s24, 256  }
 0x167   : > { %1004 = vsyncadd (%p750_p3), %s520_s24, 4294967040  ;;  %s23_s20 = sadd.s32 1, %s1027_s20   ;;  %s1343_s15 = smov %s1011_s16 }
 0x168   : > { %p20_p9 = scmp.ge.s32.totalorder %s23_s20, 4   ;;  %s1344_s16 = smov %s1015_s17 }
 0x169   : > { %s1345_s17 = smov %s1187_s10  ;;  %s1346_s18 = smov %s1023_s19 }
 0x16a   : > { %s1347_s19 = smov %s1349_s29  ;;  %22 = sbr.rel (!%p20_p9) target bundleno = 11 (0xb), region = 103 }
 0x16f   :  { %525 = vsyncpa [#allocation3], 1 }
 0x170   :  { %527 = vsyncpa [#allocation3 + $0x1], 1 }
 0x171   :  { %528 = vsyncpa [#allocation6], 1 }
 0x172   :  { %529 = vsyncpa [#allocation4], 1 }
 0x173   :  { %531 = vsyncpa [#allocation4 + $0x1], 1 }
 0x174   :  { %532 = vsyncpa [#allocation10], 1 }
 0x175   :  { %534 = vsyncpa [#allocation10 + $0x1], 1 }

</bundles_post_ra>
